<compile_context>
chip_gen: v7x
topology: tpu7x:2x2x1
jax: 0.10.0
libtpu: 0.0.40
codegen_flags: <defaults>
</compile_context>

<pallas_src>
import math

import jax
import jax.numpy as jnp
from jax.experimental import pallas as pl
from jax.experimental.pallas import tpu as pltpu

LANE = 128


# ----------------------------------------------------------------------------
# Pallas kernel: Tucker-factored complex spectral contraction.
# ----------------------------------------------------------------------------
def _tucker_spectral_kernel(x_ref, ut_ref, v_ref, gs_ref, y_ref):
    # x_ref block:  (1, 2, Cin, Mt)   [real, imag] planes of x_ft (modes on lanes)
    # ut_ref block: (2, r1, Cin)      U transposed, [real, imag]
    # v_ref block:  (2, Cout, r2)     [real, imag]
    # gs_ref block: (2, r1, r2, Mt)   GS = sum_r3 G*S, [real, imag]
    # y_ref block:  (1, 2, Cout, Mt)
    f32 = jnp.float32

    x = x_ref[0]                        # (2, Cin, Mt)
    xr, xi = x[0], x[1]                 # (Cin, Mt)
    utr, uti = ut_ref[0], ut_ref[1]     # (r1, Cin)
    vr, vi = v_ref[0], v_ref[1]         # (Cout, r2)
    gsr, gsi = gs_ref[0], gs_ref[1]     # (r1, r2, Mt)

    # ---- p = U^T x  (complex), contraction over Cin on the MXU --------------
    pr = (jnp.dot(utr, xr, preferred_element_type=f32)
          - jnp.dot(uti, xi, preferred_element_type=f32))        # (r1, Mt)
    pi = (jnp.dot(utr, xi, preferred_element_type=f32)
          + jnp.dot(uti, xr, preferred_element_type=f32))        # (r1, Mt)

    # ---- q[r2, m] = sum_r1 GS[r1, r2, m] * p[r1, m]  (complex, tiny VPU step)
    pr_e = pr[:, None, :]                                        # (r1, 1, Mt)
    pi_e = pi[:, None, :]
    qr = jnp.sum(gsr * pr_e - gsi * pi_e, axis=0)                # (r2, Mt)
    qi = jnp.sum(gsr * pi_e + gsi * pr_e, axis=0)                # (r2, Mt)

    # ---- y = V q  (complex), contraction over r2 on the MXU ------------------
    yr = (jnp.dot(vr, qr, preferred_element_type=f32)
          - jnp.dot(vi, qi, preferred_element_type=f32))         # (Cout, Mt)
    yi = (jnp.dot(vr, qi, preferred_element_type=f32)
          + jnp.dot(vi, qr, preferred_element_type=f32))         # (Cout, Mt)

    y_ref[0, 0] = yr
    y_ref[0, 1] = yi


def tucker_spectral_contract(x_pack, ut_pack, v_pack, gs_pack, *, m_tile):
    """x_pack: (B,2,Cin,Mpad)  ut_pack: (2,r1,Cin)  v_pack: (2,Cout,r2)
    gs_pack: (2,r1,r2,Mpad).  Returns y_pack: (B,2,Cout,Mpad) float32."""
    B, _, Cin, Mpad = x_pack.shape
    r1, r2 = gs_pack.shape[1], gs_pack.shape[2]
    Cout = v_pack.shape[1]
    assert Mpad % m_tile == 0
    n_mt = Mpad // m_tile

    flops = int(8 * B * Mpad * (r1 * Cin + r1 * r2 + r2 * Cout))
    bytes_accessed = int(4 * (x_pack.size + gs_pack.size + ut_pack.size
                              + v_pack.size + B * 2 * Cout * Mpad))

    grid_spec = pltpu.PrefetchScalarGridSpec(
        num_scalar_prefetch=0,
        grid=(n_mt, B),   # b innermost: GS block index constant over inner axis
        in_specs=[
            pl.BlockSpec((1, 2, Cin, m_tile), lambda mt, b: (b, 0, 0, mt)),
            pl.BlockSpec((2, r1, Cin), lambda mt, b: (0, 0, 0)),
            pl.BlockSpec((2, Cout, r2), lambda mt, b: (0, 0, 0)),
            pl.BlockSpec((2, r1, r2, m_tile), lambda mt, b: (0, 0, 0, mt)),
        ],
        out_specs=pl.BlockSpec((1, 2, Cout, m_tile), lambda mt, b: (b, 0, 0, mt)),
    )
    return pl.pallas_call(
        _tucker_spectral_kernel,
        out_shape=jax.ShapeDtypeStruct((B, 2, Cout, Mpad), jnp.float32),
        grid_spec=grid_spec,
        compiler_params=pltpu.CompilerParams(
            dimension_semantics=("parallel", "parallel")),
        cost_estimate=pl.CostEstimate(flops=flops, transcendentals=0,
                                      bytes_accessed=bytes_accessed),
    )(x_pack, ut_pack, v_pack, gs_pack)


# ----------------------------------------------------------------------------
# Module: parameters + forward
# ----------------------------------------------------------------------------
def _xavier_normal(key, shape):
    # Matches torch.nn.init.xavier_normal_ fan computation.
    rf = 1
    for d in shape[2:]:
        rf *= d
    fan_in = shape[1] * rf
    fan_out = shape[0] * rf
    std = math.sqrt(2.0 / float(fan_in + fan_out))
    return std * jax.random.normal(key, shape, dtype=jnp.float32)


def init_tucker_params(key, in_channels, out_channels, modes, ranks):
    mx, my = modes
    r1, r2, r3 = ranks
    ks = jax.random.split(key, 8)
    U = _xavier_normal(ks[0], (in_channels, r1)) + 1j * (
        0.01 * jax.random.normal(ks[1], (in_channels, r1), dtype=jnp.float32))
    V = _xavier_normal(ks[2], (out_channels, r2)) + 1j * (
        0.01 * jax.random.normal(ks[3], (out_channels, r2), dtype=jnp.float32))
    S = _xavier_normal(ks[4], (mx, my, r3)) + 1j * (
        0.01 * jax.random.normal(ks[5], (mx, my, r3), dtype=jnp.float32))
    G = _xavier_normal(ks[6], (r1, r2, r3)) + 1j * (
        0.01 * jax.random.normal(ks[7], (r1, r2, r3), dtype=jnp.float32))
    return dict(U=U.astype(jnp.complex64), V=V.astype(jnp.complex64),
                S=S.astype(jnp.complex64), G=G.astype(jnp.complex64))


def tucker_spectral_conv2d(params, x, modes, scaling=1):
    """Forward pass of TuckerSpectralConv2d. x: (B, Cin, H, W) float32 (NCHW)."""
    mx, my = modes
    B, Cin, H, W = x.shape
    assert mx <= H, "modes_x must be <= H"
    assert my <= W // 2 + 1, "modes_y must be <= W//2 + 1"

    U, V, S, G = params["U"], params["V"], params["S"], params["G"]
    Cout, r2 = V.shape
    r1 = U.shape[1]

    # ---- FFT (plain JAX; no Pallas FFT primitive) ---------------------------
    # TODO(synk): rfft2/irfft2 have no Pallas equivalent; kept in JAX.
    x_ft = jnp.fft.rfft2(x, axes=(-2, -1), norm="ortho")          # (B,Cin,H,W//2+1)
    x_low = x_ft[:, :, :mx, :my]                                  # (B,Cin,mx,my)

    # ---- Input-independent parameter setup (plain JAX): GS = sum_r3 G*S -----
    M = mx * my
    GS = jnp.einsum("jkl,ml->jkm", G, S.reshape(M, -1))           # (r1,r2,M) c64

    # ---- Pack real/imag, pad mode (lane) axis to a multiple of 128 ----------
    m128 = ((M + LANE - 1) // LANE) * LANE
    m_tile = m128 if m128 <= 1024 else 512
    m_pad = ((m128 + m_tile - 1) // m_tile) * m_tile
    pad = m_pad - M

    x_flat = x_low.reshape(B, Cin, M)
    x_pack = jnp.stack([jnp.real(x_flat), jnp.imag(x_flat)], axis=1)
    x_pack = jnp.pad(x_pack.astype(jnp.float32),
                     ((0, 0), (0, 0), (0, 0), (0, pad)))          # (B,2,Cin,Mpad)
    gs_pack = jnp.stack([jnp.real(GS), jnp.imag(GS)], axis=0)
    gs_pack = jnp.pad(gs_pack.astype(jnp.float32),
                      ((0, 0), (0, 0), (0, 0), (0, pad)))         # (2,r1,r2,Mpad)
    ut = jnp.swapaxes(U, 0, 1)                                    # (r1, Cin)
    ut_pack = jnp.stack([jnp.real(ut), jnp.imag(ut)], axis=0).astype(jnp.float32)
    v_pack = jnp.stack([jnp.real(V), jnp.imag(V)], axis=0).astype(jnp.float32)

    # ---- Spectral contraction (Pallas hot path) ------------------------------
    y_pack = tucker_spectral_contract(x_pack, ut_pack, v_pack, gs_pack,
                                      m_tile=m_tile)              # (B,2,Cout,Mpad)

    yr = y_pack[:, 0, :, :M].reshape(B, Cout, mx, my)
    yi = y_pack[:, 1, :, :M].reshape(B, Cout, mx, my)
    y_low = (yr + 1j * yi).astype(jnp.complex64)

    # ---- Zero-pad spectrum and inverse FFT -----------------------------------
    out_ft = jnp.zeros((B, Cout, H, W // 2 + 1), dtype=jnp.complex64)
    out_ft = out_ft.at[:, :, :mx, :my].set(y_low)
    y = jnp.fft.irfft2(out_ft, s=(int(H * scaling), int(W * scaling)),
                       axes=(-2, -1), norm="ortho")
    return y


# ----------------------------------------------------------------------------
# Pure-JAX reference (mirrors the PyTorch module) for sanity checking.
# ----------------------------------------------------------------------------
def _reference_forward(params, x, modes, scaling=1):
    mx, my = modes
    B, Cin, H, W = x.shape
    U, V, S, G = params["U"], params["V"], params["S"], params["G"]
    Cout = V.shape[0]
    x_ft = jnp.fft.rfft2(x, axes=(-2, -1), norm="ortho")
    x_low = x_ft[:, :, :mx, :my]
    G1 = jnp.einsum("ij,jkl->ikl", U, G)
    G2 = jnp.einsum("ok,ikl->iol", V, G1)
    W_hat = jnp.einsum("iol,xyl->ioxy", G2, S)
    y_low = jnp.einsum("bixy,ioxy->boxy", x_low, W_hat)
    out_ft = jnp.zeros((B, Cout, H, W // 2 + 1), dtype=jnp.complex64)
    out_ft = out_ft.at[:, :, :mx, :my].set(y_low)
    return jnp.fft.irfft2(out_ft, s=(int(H * scaling), int(W * scaling)),
                          axes=(-2, -1), norm="ortho")


if __name__ == "__main__":
    # Small, module-consistent shapes.
    B, Cin, Cout = 2, 4, 4
    H, W = 16, 16
    modes = (8, 8)        # modes_x <= H, modes_y <= W//2 + 1 = 9
    ranks = (2, 2, 4)
    scaling = 1

    key = jax.random.PRNGKey(0)
    k_param, k_x = jax.random.split(key)
    params = init_tucker_params(k_param, Cin, Cout, modes, ranks)
    x = jax.random.normal(k_x, (B, Cin, H, W), dtype=jnp.float32)

    y = tucker_spectral_conv2d(params, x, modes, scaling)
    y = jax.block_until_ready(y)

    y_ref = jax.block_until_ready(_reference_forward(params, x, modes, scaling))
    assert y.shape == (B, Cout, int(H * scaling), int(W * scaling))
    assert jnp.allclose(y, y_ref, atol=1e-4, rtol=1e-4), "mismatch vs JAX reference"

    print("KERNEL_OK")
</pallas_src>

<mosaic_0001>
module attributes {stable_mosaic.version = 11 : i64} {
  func.func @_tucker_spectral_kernel(%arg0: i32, %arg1: i32, %arg2: memref<1x2x4x128xf32, #tpu.memory_space<vmem>>, %arg3: memref<2x2x4xf32, #tpu.memory_space<vmem>>, %arg4: memref<2x4x2xf32, #tpu.memory_space<vmem>>, %arg5: memref<2x2x2x128xf32, #tpu.memory_space<vmem>>, %arg6: memref<1x2x4x128xf32, #tpu.memory_space<vmem>>) attributes {dimension_semantics = [#tpu.dimension_semantics<parallel>, #tpu.dimension_semantics<parallel>], iteration_bounds = array<i64: 1, 2>, scalar_prefetch = 0 : i64, scratch_operands = 0 : i64, tpu.core_type = #tpu.core_type<tc>, window_params = [{transform_indices = @transform_0, window_bounds = array<i64: 1, 2, 4, 128>}, {pipeline_mode = #tpu.pipeline_mode<synchronous>, transform_indices = @transform_1, window_bounds = array<i64: 2, 2, 4>}, {pipeline_mode = #tpu.pipeline_mode<synchronous>, transform_indices = @transform_2, window_bounds = array<i64: 2, 4, 2>}, {transform_indices = @transform_3, window_bounds = array<i64: 2, 2, 2, 128>}, {transform_indices = @transform_4, window_bounds = array<i64: 1, 2, 4, 128>}]} {
    %c0 = arith.constant 0 : index
    %c0_0 = arith.constant 0 : index
    %c0_1 = arith.constant 0 : index
    %c0_2 = arith.constant 0 : index
    %0 = vector.load %arg2[%c0, %c0_0, %c0_1, %c0_2] : memref<1x2x4x128xf32, #tpu.memory_space<vmem>>, vector<1x2x4x128xf32>
    %1 = vector.shape_cast %0 : vector<1x2x4x128xf32> to vector<2x4x128xf32>
    %2 = vector.extract_strided_slice %1 {offsets = [0, 0, 0], sizes = [1, 4, 128], strides = [1, 1, 1]} : vector<2x4x128xf32> to vector<1x4x128xf32>
    %3 = vector.shape_cast %2 : vector<1x4x128xf32> to vector<4x128xf32>
    %4 = vector.extract_strided_slice %1 {offsets = [1, 0, 0], sizes = [1, 4, 128], strides = [1, 1, 1]} : vector<2x4x128xf32> to vector<1x4x128xf32>
    %5 = vector.shape_cast %4 : vector<1x4x128xf32> to vector<4x128xf32>
    %c0_3 = arith.constant 0 : index
    %c0_4 = arith.constant 0 : index
    %c0_5 = arith.constant 0 : index
    %6 = vector.load %arg3[%c0_3, %c0_4, %c0_5] : memref<2x2x4xf32, #tpu.memory_space<vmem>>, vector<1x2x4xf32>
    %7 = vector.shape_cast %6 : vector<1x2x4xf32> to vector<2x4xf32>
    %c1 = arith.constant 1 : index
    %c0_6 = arith.constant 0 : index
    %c0_7 = arith.constant 0 : index
    %8 = vector.load %arg3[%c1, %c0_6, %c0_7] : memref<2x2x4xf32, #tpu.memory_space<vmem>>, vector<1x2x4xf32>
    %9 = vector.shape_cast %8 : vector<1x2x4xf32> to vector<2x4xf32>
    %c0_8 = arith.constant 0 : index
    %c0_9 = arith.constant 0 : index
    %c0_10 = arith.constant 0 : index
    %10 = vector.load %arg4[%c0_8, %c0_9, %c0_10] : memref<2x4x2xf32, #tpu.memory_space<vmem>>, vector<1x4x2xf32>
    %11 = vector.shape_cast %10 : vector<1x4x2xf32> to vector<4x2xf32>
    %c1_11 = arith.constant 1 : index
    %c0_12 = arith.constant 0 : index
    %c0_13 = arith.constant 0 : index
    %12 = vector.load %arg4[%c1_11, %c0_12, %c0_13] : memref<2x4x2xf32, #tpu.memory_space<vmem>>, vector<1x4x2xf32>
    %13 = vector.shape_cast %12 : vector<1x4x2xf32> to vector<4x2xf32>
    %c0_14 = arith.constant 0 : index
    %c0_15 = arith.constant 0 : index
    %c0_16 = arith.constant 0 : index
    %c0_17 = arith.constant 0 : index
    %14 = vector.load %arg5[%c0_14, %c0_15, %c0_16, %c0_17] : memref<2x2x2x128xf32, #tpu.memory_space<vmem>>, vector<1x2x2x128xf32>
    %15 = vector.shape_cast %14 : vector<1x2x2x128xf32> to vector<2x2x128xf32>
    %c1_18 = arith.constant 1 : index
    %c0_19 = arith.constant 0 : index
    %c0_20 = arith.constant 0 : index
    %c0_21 = arith.constant 0 : index
    %16 = vector.load %arg5[%c1_18, %c0_19, %c0_20, %c0_21] : memref<2x2x2x128xf32, #tpu.memory_space<vmem>>, vector<1x2x2x128xf32>
    %17 = vector.shape_cast %16 : vector<1x2x2x128xf32> to vector<2x2x128xf32>
    %cst = arith.constant dense<0.000000e+00> : vector<2x128xf32>
    %18 = tpu.matmul %7, %3, %cst {dimension_numbers = #tpu.dot_dimension_numbers<[1], [0], [0], [1], [0, 0, 1, 1], [], []>} : vector<2x4xf32>, vector<4x128xf32>, vector<2x128xf32> -> vector<2x128xf32>
    %cst_22 = arith.constant dense<0.000000e+00> : vector<2x128xf32>
    %19 = tpu.matmul %9, %5, %cst_22 {dimension_numbers = #tpu.dot_dimension_numbers<[1], [0], [0], [1], [0, 0, 1, 1], [], []>} : vector<2x4xf32>, vector<4x128xf32>, vector<2x128xf32> -> vector<2x128xf32>
    %20 = arith.subf %18, %19 : vector<2x128xf32>
    %cst_23 = arith.constant dense<0.000000e+00> : vector<2x128xf32>
    %21 = tpu.matmul %7, %5, %cst_23 {dimension_numbers = #tpu.dot_dimension_numbers<[1], [0], [0], [1], [0, 0, 1, 1], [], []>} : vector<2x4xf32>, vector<4x128xf32>, vector<2x128xf32> -> vector<2x128xf32>
    %cst_24 = arith.constant dense<0.000000e+00> : vector<2x128xf32>
    %22 = tpu.matmul %9, %3, %cst_24 {dimension_numbers = #tpu.dot_dimension_numbers<[1], [0], [0], [1], [0, 0, 1, 1], [], []>} : vector<2x4xf32>, vector<4x128xf32>, vector<2x128xf32> -> vector<2x128xf32>
    %23 = arith.addf %21, %22 : vector<2x128xf32>
    %24 = vector.shape_cast %20 : vector<2x128xf32> to vector<2x1x128xf32>
    %25 = vector.shape_cast %23 : vector<2x128xf32> to vector<2x1x128xf32>
    %26 = vector.broadcast %24 : vector<2x1x128xf32> to vector<2x2x128xf32>
    %27 = arith.mulf %15, %26 : vector<2x2x128xf32>
    %28 = vector.broadcast %25 : vector<2x1x128xf32> to vector<2x2x128xf32>
    %29 = arith.mulf %17, %28 : vector<2x2x128xf32>
    %30 = arith.subf %27, %29 : vector<2x2x128xf32>
    %cst_25 = arith.constant dense<0.000000e+00> : vector<2x128xf32>
    %31 = vector.multi_reduction <add>, %30, %cst_25 [0] : vector<2x2x128xf32> to vector<2x128xf32>
    %32 = vector.broadcast %25 : vector<2x1x128xf32> to vector<2x2x128xf32>
    %33 = arith.mulf %15, %32 : vector<2x2x128xf32>
    %34 = vector.broadcast %24 : vector<2x1x128xf32> to vector<2x2x128xf32>
    %35 = arith.mulf %17, %34 : vector<2x2x128xf32>
    %36 = arith.addf %33, %35 : vector<2x2x128xf32>
    %cst_26 = arith.constant dense<0.000000e+00> : vector<2x128xf32>
    %37 = vector.multi_reduction <add>, %36, %cst_26 [0] : vector<2x2x128xf32> to vector<2x128xf32>
    %cst_27 = arith.constant dense<0.000000e+00> : vector<4x128xf32>
    %38 = tpu.matmul %11, %31, %cst_27 {dimension_numbers = #tpu.dot_dimension_numbers<[1], [0], [0], [1], [0, 0, 1, 1], [], []>} : vector<4x2xf32>, vector<2x128xf32>, vector<4x128xf32> -> vector<4x128xf32>
    %cst_28 = arith.constant dense<0.000000e+00> : vector<4x128xf32>
    %39 = tpu.matmul %13, %37, %cst_28 {dimension_numbers = #tpu.dot_dimension_numbers<[1], [0], [0], [1], [0, 0, 1, 1], [], []>} : vector<4x2xf32>, vector<2x128xf32>, vector<4x128xf32> -> vector<4x128xf32>
    %40 = arith.subf %38, %39 : vector<4x128xf32>
    %cst_29 = arith.constant dense<0.000000e+00> : vector<4x128xf32>
    %41 = tpu.matmul %11, %37, %cst_29 {dimension_numbers = #tpu.dot_dimension_numbers<[1], [0], [0], [1], [0, 0, 1, 1], [], []>} : vector<4x2xf32>, vector<2x128xf32>, vector<4x128xf32> -> vector<4x128xf32>
    %cst_30 = arith.constant dense<0.000000e+00> : vector<4x128xf32>
    %42 = tpu.matmul %13, %31, %cst_30 {dimension_numbers = #tpu.dot_dimension_numbers<[1], [0], [0], [1], [0, 0, 1, 1], [], []>} : vector<4x2xf32>, vector<2x128xf32>, vector<4x128xf32> -> vector<4x128xf32>
    %43 = arith.addf %41, %42 : vector<4x128xf32>
    %c0_31 = arith.constant 0 : index
    %c0_32 = arith.constant 0 : index
    %c0_33 = arith.constant 0 : index
    %c0_34 = arith.constant 0 : index
    %44 = vector.load %arg6[%c0_31, %c0_32, %c0_33, %c0_34] : memref<1x2x4x128xf32, #tpu.memory_space<vmem>>, vector<1x1x4x128xf32>
    %45 = vector.shape_cast %44 : vector<1x1x4x128xf32> to vector<4x128xf32>
    %46 = vector.shape_cast %40 : vector<4x128xf32> to vector<1x1x4x128xf32>
    tpu.vector_store %arg6[%c0_31, %c0_32, %c0_33, %c0_34], %46 {strides = array<i32>} : memref<1x2x4x128xf32, #tpu.memory_space<vmem>>, vector<1x1x4x128xf32>,
    %c0_35 = arith.constant 0 : index
    %c1_36 = arith.constant 1 : index
    %c0_37 = arith.constant 0 : index
    %c0_38 = arith.constant 0 : index
    %47 = vector.load %arg6[%c0_35, %c1_36, %c0_37, %c0_38] : memref<1x2x4x128xf32, #tpu.memory_space<vmem>>, vector<1x1x4x128xf32>
    %48 = vector.shape_cast %47 : vector<1x1x4x128xf32> to vector<4x128xf32>
    %49 = vector.shape_cast %43 : vector<4x128xf32> to vector<1x1x4x128xf32>
    tpu.vector_store %arg6[%c0_35, %c1_36, %c0_37, %c0_38], %49 {strides = array<i32>} : memref<1x2x4x128xf32, #tpu.memory_space<vmem>>, vector<1x1x4x128xf32>,
    return
  }
  func.func @transform_0(%arg0: i32, %arg1: i32) -> (i32, i32, i32, i32) {
    %c0_i32 = arith.constant 0 : i32
    %c0_i32_0 = arith.constant 0 : i32
    %c0_i32_1 = arith.constant 0 : i32
    return %arg1, %c0_i32, %c0_i32_0, %arg0 : i32, i32, i32, i32
  }
  func.func @transform_1(%arg0: i32, %arg1: i32) -> (i32, i32, i32) {
    %c0_i32 = arith.constant 0 : i32
    %c0_i32_0 = arith.constant 0 : i32
    %c0_i32_1 = arith.constant 0 : i32
    %c0_i32_2 = arith.constant 0 : i32
    return %c0_i32, %c0_i32_0, %c0_i32_1 : i32, i32, i32
  }
  func.func @transform_2(%arg0: i32, %arg1: i32) -> (i32, i32, i32) {
    %c0_i32 = arith.constant 0 : i32
    %c0_i32_0 = arith.constant 0 : i32
    %c0_i32_1 = arith.constant 0 : i32
    %c0_i32_2 = arith.constant 0 : i32
    return %c0_i32, %c0_i32_0, %c0_i32_1 : i32, i32, i32
  }
  func.func @transform_3(%arg0: i32, %arg1: i32) -> (i32, i32, i32, i32) {
    %c0_i32 = arith.constant 0 : i32
    %c0_i32_0 = arith.constant 0 : i32
    %c0_i32_1 = arith.constant 0 : i32
    %c0_i32_2 = arith.constant 0 : i32
    return %c0_i32, %c0_i32_0, %c0_i32_1, %arg0 : i32, i32, i32, i32
  }
  func.func @transform_4(%arg0: i32, %arg1: i32) -> (i32, i32, i32, i32) {
    %c0_i32 = arith.constant 0 : i32
    %c0_i32_0 = arith.constant 0 : i32
    %c0_i32_1 = arith.constant 0 : i32
    return %arg1, %c0_i32, %c0_i32_0, %arg0 : i32, i32, i32, i32
  }
}

</mosaic_0001>

<bundles_post_ra>
// kernel: tpu_custom_call.1
= control target key start
LH: loop header
LB: loop body
LE: loop exit
PB: predicated region body
PF: predicated region fallthrough
CT: control target
= control target key end

     0   :  { %9 = vsyncpa [#allocation3], 0  ;;  %s1610_s0 = inlined_call_operand.hbm [shape: f32[2,2,4,128], index: 0, kind: input, shape index: {}]   ;;  %s1611_s1 = inlined_call_operand.vmem [shape: f32[2,2,4], index: 1, kind: input, shape index: {}]   ;;  %s1612_s2 = inlined_call_operand.vmem [shape: f32[2,4,2], index: 2, kind: input, shape index: {}]   ;;  %s1613_s3 = inlined_call_operand.vmem [shape: f32[2,2,2,128], index: 3, kind: input, shape index: {}]   ;;  %s1614_s4 = inlined_call_operand.hbm [shape: f32[2,2,4,128], index: 4, kind: output, shape index: {}]  }
   0x1   :  { %11 = vsyncpa [#allocation3 + $0x1], 0 }
   0x2   :  { %12 = vsyncpa [#allocation4], 0 }
   0x3   :  { %14 = vsyncpa [#allocation4 + $0x1], 0  ;;  %s1371_s15 = smov 0   ;;  %s1373_s16 = smov 0  }
   0x4   :  { %s1375_s17 = smov 0   ;;  %s1377_s18 = smov 0  }
   0x5   :  { %s1379_s19 = smov 0   ;;  %s1381_s20 = smov 0  }
   0x6 LB: > { %s1055_s21 = sadd.s32 4294967295, %s1335_s20   ;;  %s1056_s22 = sadd.s32 4294967294, %s1335_s20   ;;  %s1335_s20 = sphi %s1381_s20, %s20_s20   ;;  %s1331_s19 = sphi %s1379_s19, %s1629_s19   ;;  %s1327_s18 = sphi %s1377_s18, %s1628_s18   ;;  %s1323_s17 = sphi %s1375_s17, %s1627_s17   ;;  %s1319_s16 = sphi %s1373_s16, %s1626_s16   ;;  %s1315_s15 = sphi %s1371_s15, %s1625_s15  }
   0x7   : > { %s29_s23 = sadd.s32 1, %s1331_s19  ;;  %s41_s24 = sadd.s32 1, %s1323_s17 }
   0x8   : > { %p30_p0 = scmp.ge.s32.totalorder %s29_s23, 2  ;;  %p48_p1 = scmp.ne.s32.totalorder %s1323_s17, %s1319_s16 }
   0x9   : > { %p49_p2 = scmp.eq.s32.totalorder %s1335_s20, 0  ;;  %p54_p3 = scmp.ne.s32.totalorder %s1319_s16, %s1315_s15 }
   0xa   : > { %s1631_s23 = smov (%p30_p0, %s29_s23), 0  ;;  %p55_p5 = scmp.eq.s32.totalorder %s1055_s21, 0 }
   0xb   : > { %p1412_p4 = por %p49_p2, %p48_p1  ;;  %s36_s26 = ssub.s32 %s1331_s19, %s1631_s23 }
   0xc   : > { %p148_p6 = scmp.eq.s32.totalorder %s1055_s21, 1  ;;  %p39_p7 = scmp.eq.s32.totalorder %s36_s26, 0 }
   0xd   : > { %p1418_p8 = por %p55_p5, %p54_p3  ;;  %p154_p10 = scmp.eq.s32.totalorder %s1056_s22, 1 }
   0xe   : > { %p1422_p9 = por %p148_p6, %p48_p1  ;;  %p1166_p13 = scmp.lt.s32.totalorder %s1335_s20, 2 }
   0xf   : > { %s1427_s29 = scalar_select %p39_p7, %s1323_s17, %s41_s24  }
  0x10   : > { %s1618_s28 = scalar_select %p1422_p9, 1, 0 }
  0x11   : > { %p1429_p11 = por %p154_p10, %p54_p3  ;;  %s187_s5 = sand.u32 1, %s1323_s17  }
  0x12   : > { %s1060_s6 = sshll.u32 %s187_s5, 3  ;;  %s1092_s7 = sshll.u32 %s1331_s19, 7 }
  0x13   : > { %s1619_s30 = scalar_select %p1429_p11, 1, 0 }
  0x14   : > { %s1440_s10 = scalar_lea.hbm %s1610_s0, %s1092_s7  ;;  %s191_s11 = scalar_lea.vmem [#allocation2], %s1060_s6 }
  0x15   : > { %s199_s12 = sshll.u32 %s191_s11, 4  ;;  %p1446_p0 = pnand %p1166_p13, %p1412_p4  ;;  %s1442_s12 = int_to_ptr.vmem [resolvable:$true] %s199_s12 }
  0x16   : > { %s1451_s14 = scalar_lea.sflag [#allocation3], %s187_s5  ;;  %s1223_s21 = scalar_lea.hbm %s1440_s10, 128 }
  0x17   : > { %p1224_p2 = scmp.ne.s32.totalorder %s1440_s10, %s1223_s21  ;;  %p1225_p3 = pneg %p1446_p0 }
  0x18   : > { %s1228_s25 = scalar_lea.hbm %s1610_s0, 256  ;;  %p1229_p4 = scmp.lt.u32.totalorder %s1440_s10, %s1610_s0 }
  0x19   : > { %p1226_p5 = pnand %p1225_p3, %p1224_p2  ;;  %p1230_p7 = scmp.lt.u32.totalorder %s1228_s25, %s1223_s21 }
  0x1a   : > { %p1232_p13 = scmp.lt.u32.totalorder %s1223_s21, %s1440_s10 }
  0x1b   : > { %p1227_p6 = pneg %p1226_p5  ;;  %p1231_p10 = por %p1230_p7, %p1229_p4 }
  0x1d   : > { %p1233_p12 = por %p1232_p13, %p1231_p10 }
  0x1f   : > { %p1234_p1 = pnand %p1233_p12, %p1227_p6 }
  0x21   : > { %1237 = shalt.err (!%p1234_p1)
}
  0x22   : > { %s1238_s5 = scalar_lea.vmem %s1442_s12, 128  ;;  %s1337_s7 = smov [#allocation2]  }
  0x23   : > { %p1239_p2 = scmp.ne.s32.totalorder %s1442_s12, %s1238_s5  ;;  %s1243_s8 = sshll.u32 %s1337_s7, 4  ;;  %s1244_s8 = int_to_ptr.vmem [resolvable:$false] %s1243_s8 }
  0x24   : > { %s1245_s9 = scalar_lea.vmem %s1244_s8, 256  ;;  %p1246_p9 = scmp.lt.s32.totalorder %s1442_s12, %s1244_s8 }
  0x25   : > { %p1241_p5 = pnand %p1239_p2, %p1225_p3  ;;  %p1247_p4 = scmp.lt.s32.totalorder %s1245_s9, %s1238_s5 }
  0x27   : > { %p1242_p11 = pneg %p1241_p5  ;;  %p1248_p7 = por %p1247_p4, %p1246_p9 }
  0x29   : > { %p1249_p10 = pnand %p1248_p7, %p1242_p11 }
  0x2b   : > { %1252 = shalt.err (!%p1249_p10)
}
  0x2c   : > { %s1338_s11 = smov 64   ;;  %s1339_s21 = smov 4  }
  0x2d   : > { %1161 = dma.hbm_to_vmem [thread:$0]  (!%p1446_p0), %s1440_s10, 128, %s1442_s12, %s1451_s14, %s1338_s11, %s1338_s11, %s1339_s21  }
  0x2e   : > { %p207_p12 = scmp.lt.s32.totalorder %s1335_s20, 3  ;;  %p1621_p1 = scmp.ge.s32.totalorder %s1335_s20, 1 }
  0x30   : > { %p208_p3 = pnand %p1621_p1, %p207_p12 }
  0x31   : > { %s1483_s22 = sand.u32 (!%p208_p3), 1, %s1319_s16  }
  0x32   : > { %211 = sbr.rel (%p208_p3) target bundleno = 533 (0x215), region = 36  ;;  %s1064_s24 = sshll.u32 (!%p208_p3), %s1483_s22, 3 }
  0x33   : > { %s214_s25 = scalar_lea.sflag (!%p208_p3), [#allocation3], %s1483_s22  ;;  %s217_s26 = scalar_lea.vmem (!%p208_p3), [#allocation2], %s1064_s24 }
  0x39   : > { %1306 = dma.done.wait (%p1418_p8), %s214_s25, 128  }
  0x3a   : > { %1308 = vsyncadd (%p1418_p8), %s214_s25, 4294967168  ;;  %v1340_v0 = vmov 0.0   ;;  %vm1341_vm0 = vmmov 0   ;;  %vm267_vm1 = vcmask 1043456   ;;  %vm263_vm2 = vcmask 31744   ;;  %s245_s27 = scalar_lea.vmem [#allocation5], %s1064_s24 }
  0x3b   : > { %1110 = vmatprep.subr.mxu1 %v1340_v0  ;;  %1120 = vmatprep.subr.mxu0 %v1340_v0  ;;  %v250_v1 = vld [vmem:[%s217_s26] sm:$0xf]  ;;  %v251_v4 = vld [vmem:[%s217_s26 + $0x4] sm:$0xf]  ;;  %v1342_v5 = vmov 1966171168   ;;  %v562_v7 = vlaneseq }
  0x3c   : > { %1112 = vmatprep.mubr.msk.f32.mxu1 %vm1341_vm0, %v1340_v0  ;;  %1122 = vmatprep.mubr.msk.f32.mxu0 %vm1341_vm0, %v1340_v0  ;;  %v252_v2 = vld [vmem:[%s1611_s1] sm:$0x3]  ;;  %v1066_v3 = vld [vmem:[%s1611_s1 + $0x2] sm:$0x3]  ;;  %v560_v6 = vunpack.c.l.s4 %v1342_v5  ;;  %v1068_v28 = vld [vmem:[%s1613_s3 + $0x4] sm:$0x3] }
  0x3d   : > { %1111 = vmatpush3.msk.msra.mxu1 %vm267_vm1, %v250_v1  ;;  %1121 = vmatpush3.msk.msra.mxu0 %vm267_vm1, %v250_v1  ;;  %v563_v9 = vshrl.u32 %v562_v7, 7  ;;  %v258_v25 = vld [vmem:[%s1613_s3] sm:$0x3]  ;;  %v259_v30 = vld [vmem:[%s1613_s3 + $0x2] sm:$0x3]  ;;  %vm630_vm3 = vcmask 1041408  }
  0x3e   : > { %1113 = vmatmul.mubr.msk.f32.vlgmr.msra.gmra.mrb[0].mxu1 %vm263_vm2, %v252_v2  ;;  %1123 = vmatmul.mubr.msk.f32.vlgmr.msra.gmra.mrb[0].mxu0 %vm263_vm2, %v1066_v3  ;;  %v561_v8 = vunpack.c.0.s8 %v560_v6  ;;  %v1069_v31 = vld [vmem:[%s1613_s3 + $0x6] sm:$0x3]  ;;  %vm643_vm4 = vcmask 15360   ;;  %v255_v54 = vld [vmem:[%s1612_s2] sm:$0xf]  ;;  %s955_s13 = sshll.u32 %s245_s27, 4  ;;  %s1556_s13 = int_to_ptr.vmem [resolvable:$true] %s955_s13 }
  0x3f   : > { %1115 = vmatprep.subr.mxu1 %v1340_v0  ;;  %1125 = vmatprep.subr.mxu0 %v1340_v0  ;;  %v606_v17 = vsub.s32 0, %v563_v9  ;;  %v1067_v53 = vld [vmem:[%s1612_s2 + $0x4] sm:$0xf]  ;;  %s1093_s14 = sshll.u32 %s1327_s18, 7  ;;  %s941_s24 = scalar_lea.sflag [#allocation4], %s1483_s22 }
  0x40   : > { %1116 = vmatpush3.msk.msra.mxu1 %vm267_vm1, %v251_v4  ;;  %1117 = vmatprep.mubr.msk.f32.mxu1 %vm1341_vm0, %v1340_v0  ;;  %v564_v12 = vsub.s32 %v561_v8, %v563_v9  ;;  %s1561_s7 = scalar_lea.hbm %s1614_s4, %s1093_s14  ;;  %s1253_s8 = scalar_lea.vmem %s1556_s13, 128 }
  0x41   : > { %1126 = vmatpush3.msk.msra.mxu0 %vm267_vm1, %v251_v4  ;;  %1127 = vmatprep.mubr.msk.f32.mxu0 %vm1341_vm0, %v1340_v0  ;;  %p1254_p8 = scmp.ne.s32.totalorder %s1556_s13, %s1253_s8  ;;  %p1622_p9 = scmp.ne.s32.totalorder %s1618_s28, 0 }
  0x42   : > { %1118 = vmatmul.mubr.msk.f32.vlgmr.msra.gmra.mrb[2].mxu1 %vm263_vm2, %v1066_v3  ;;  %1130 = vmatprep.subr.mxu1 %v1340_v0  ;;  %s1343_s18 = smov [#allocation5]  }
  0x43   : > { %1140 = vmatprep.subr.mxu0 %v1340_v0  ;;  %1132 = vmatprep.mubr.msk.f32.mxu1 %vm1341_vm0, %v1340_v0  ;;  %p1255_p11 = pnand %p1254_p8, %p1622_p9  ;;  %s1257_s9 = sshll.u32 %s1343_s18, 4  ;;  %s1258_s9 = int_to_ptr.vmem [resolvable:$false] %s1257_s9 }
  0x44   : > { %s1259_s11 = scalar_lea.vmem %s1258_s9, 256  ;;  %p1260_p6 = scmp.lt.s32.totalorder %s1556_s13, %s1258_s9 }
  0x45   : > { %p1256_p0 = pneg %p1255_p11  ;;  %p1261_p13 = scmp.lt.s32.totalorder %s1259_s11, %s1253_s8 }
  0x46   : > { %1128 = vmatmul.mubr.msk.f32.vlgmr.msra.gmra.mrb[0].mxu0 %vm263_vm2, %v252_v2 }
  0x47   : > { %1142 = vmatprep.mubr.msk.f32.mxu0 %vm1341_vm0, %v1340_v0  ;;  %p1262_p2 = por %p1261_p13, %p1260_p6 }
  0x49   : > { %p1263_p5 = pnand %p1262_p2, %p1256_p0 }
 0x111   : > { %v337_v10 = vpop.f32.mrb[0].mxu1 }
 0x112   : > { %v1114_v11 = vpop.f32.mrb[1].mxu1 }
 0x115   : > { %v413_v13 = vpop.f32.mrb[2].mxu1 }
 0x116   : > { %v417_v14 = vsub.f32 %v337_v10, %v413_v13  ;;  %v1119_v15 = vpop.f32.mrb[3].mxu1 }
 0x118   : > { %v565_v16 = vrot.slane %v417_v14, %v564_v12 }
 0x119   : > { %v554_v18 = vpop.f32.mrb[0].mxu0 }
 0x11a   : > { %v566_v19 = vcombine.high %v565_v16, %v565_v16  ;;  %v573_v20 = vrot.slane %v565_v16, %v564_v12  ;;  %v588_v21 = vrot.slane %v554_v18, %v564_v12  ;;  %v1129_v22 = vpop.f32.mrb[1].mxu0 }
 0x11c   : > { %v580_v23 = vrot.slane %v566_v19, %v564_v12  ;;  %v607_v24 = vrot.slane %v573_v20, %v606_v17  ;;  %v589_v26 = vcombine.high %v588_v21, %v588_v21  ;;  %v596_v27 = vrot.slane %v588_v21, %v564_v12 }
 0x11e   : > { %v611_v29 = vrot.slane %v580_v23, %v606_v17  ;;  %v603_v32 = vrot.slane %v589_v26, %v564_v12  ;;  %v619_v33 = vrot.slane %v596_v27, %v606_v17  ;;  %v614_v34 = vmul.f32 %v607_v24, %v258_v25 }
 0x11f   : > { %v636_v38 = vmul.f32 %v1068_v28, %v607_v24 }
 0x120   : > { %v623_v35 = vrot.slane %v603_v32, %v606_v17  ;;  %v626_v36 = vmul.f32 %v1068_v28, %v619_v33  ;;  %v634_v37 = vmul.f32 %v619_v33, %v258_v25  ;;  %v615_v39 = vmul.f32 %v611_v29, %v259_v30 }
 0x121   : > { %v637_v40 = vmul.f32 %v1069_v31, %v611_v29 }
 0x122   : > { %v627_v41 = vmul.f32 %v1069_v31, %v623_v35  ;;  %v628_v42 = vsub.f32 %v614_v34, %v626_v36  ;;  %v635_v43 = vmul.f32 %v623_v35, %v259_v30  ;;  %v638_v44 = vadd.f32 %v636_v38, %v634_v37 }
 0x124   : > { %v629_v45 = vsub.f32 %v615_v39, %v627_v41  ;;  %v639_v46 = vadd.f32 %v637_v40, %v635_v43  ;;  %v631_v47 = vsel %vm630_vm3, %v628_v42, 0.0  ;;  %v640_v49 = vsel %vm630_vm3, %v638_v44, 0.0 }
 0x126   : > { %v632_v48 = vsel %vm630_vm3, %v629_v45, 0.0  ;;  %v641_v50 = vsel %vm630_vm3, %v639_v46, 0.0 }
 0x127   : > { %v633_v51 = vadd.f32 %v632_v48, %v631_v47  ;;  %v642_v52 = vadd.f32 %v641_v50, %v640_v49 }
 0x129   : > { %1131 = vmatpush3.msk.msra.mxu1 %vm630_vm3, %v633_v51  ;;  %1141 = vmatpush3.msk.msra.mxu0 %vm630_vm3, %v633_v51 }
 0x12a   : > { %1135 = vmatprep.subr.mxu1 %v1340_v0  ;;  %1143 = vmatmul.mubr.msk.f32.vlgmr.msra.gmra.mrb[2].mxu0 %vm643_vm4, %v1067_v53 }
 0x12b   : > { %1145 = vmatprep.subr.mxu0 %v1340_v0  ;;  %1133 = vmatmul.mubr.msk.f32.vlgmr.msra.gmra.mrb[4].mxu1 %vm643_vm4, %v255_v54 }
 0x12c   : > { %1136 = vmatpush3.msk.msra.mxu1 %vm630_vm3, %v642_v52  ;;  %1146 = vmatpush3.msk.msra.mxu0 %vm630_vm3, %v642_v52 }
 0x12d   : > { %1137 = vmatprep.mubr.msk.f32.mxu1 %vm1341_vm0, %v1340_v0  ;;  %1147 = vmatprep.mubr.msk.f32.mxu0 %vm1341_vm0, %v1340_v0 }
 0x12f   : > { %1138 = vmatmul.mubr.msk.f32.vlgmr.msra.gmra.mrb[6].mxu1 %vm643_vm4, %v1067_v53 }
 0x132   : > { %1148 = vmatmul.mubr.msk.f32.vlgmr.msra.gmra.mrb[2].mxu0 %vm643_vm4, %v255_v54 }
 0x1fe   : > { %v716_v55 = vpop.f32.mrb[4].mxu1 }
 0x1ff   : > { %v1134_v56 = vpop.f32.mrb[5].mxu1 }
 0x202   : > { %v792_v57 = vpop.f32.mrb[6].mxu1 }
 0x203   : > { %v796_v58 = vsub.f32 %v716_v55, %v792_v57  ;;  %v1139_v59 = vpop.f32.mrb[7].mxu1 }
 0x205   : > { %v933_v60 = vpop.f32.mrb[2].mxu0  ;;  %937 = vst [vmem:[%s245_s27] sm:$0xf] %v796_v58 }
 0x206   : > { %1086 = vst [vmem:[%s245_s27 + $0x4] sm:$0xf] %v933_v60  ;;  %v1149_v61 = vpop.f32.mrb[3].mxu0 }
 0x207   : > { %1266 = shalt.err (!%p1263_p5)
}
 0x208   : > { %s1267_s21 = scalar_lea.hbm %s1561_s7, 128  ;;  %s1271_s10 = scalar_lea.hbm %s1614_s4, 256 }
 0x209   : > { %p1268_p4 = scmp.ne.s32.totalorder %s1561_s7, %s1267_s21  ;;  %p1272_p12 = scmp.lt.u32.totalorder %s1561_s7, %s1614_s4 }
 0x20a   : > { %p1273_p1 = scmp.lt.u32.totalorder %s1271_s10, %s1267_s21  ;;  %p1275_p8 = scmp.lt.u32.totalorder %s1267_s21, %s1561_s7 }
 0x20b   : > { %p1269_p7 = pnand %p1268_p4, %p1622_p9 }
 0x20c   : > { %p1274_p3 = por %p1273_p1, %p1272_p12 }
 0x20d   : > { %p1270_p10 = pneg %p1269_p7 }
 0x20e   : > { %p1276_p11 = por %p1275_p8, %p1274_p3 }
 0x210   : > { %p1277_p0 = pnand %p1276_p11, %p1270_p10 }
 0x212   : > { %1280 = shalt.err (!%p1277_p0)
}
 0x213   : > { %s1344_s14 = smov 64   ;;  %s1345_s6 = smov 4  }
 0x214   : > { %1156 = dma.vmem_to_hbm [thread:$0]  (%p1622_p9), %s1556_s13, 128, %s1561_s7, %s941_s24, %s1344_s14, %s1344_s14, %s1345_s6  }
 0x215 PF: > { %s970_s5 = sand.u32 1, %s1315_s15   ;;  %p1623_p6 = scmp.ne.s32.totalorder %s1619_s30, 0 }
 0x216   : > { %p1624_p13 = scmp.ge.s32.totalorder %s1335_s20, 2  ;;  %s971_s8 = scalar_lea.sflag [#allocation4], %s970_s5 }
 0x218   : > { %p1163_p2 = pnand %p1624_p13, %p1623_p6 }
 0x21a   : > { %1310 = dma.done.wait (!%p1163_p2), %s971_s8, 128  }
 0x21b   : > { %1312 = vsyncadd (!%p1163_p2), %s971_s8, 4294967168  ;;  %s20_s20 = sadd.s32 1, %s1335_s20   ;;  %s1625_s15 = smov %s1319_s16 }
 0x21c   : > { %p17_p5 = scmp.ge.s32.totalorder %s20_s20, 4   ;;  %s1626_s16 = smov %s1323_s17 }
 0x21d   : > { %s1627_s17 = smov %s1427_s29  ;;  %s1628_s18 = smov %s1331_s19 }
 0x21e   : > { %s1629_s19 = smov %s1631_s23  ;;  %19 = sbr.rel (!%p17_p5) target bundleno = 6 (0x6), region = 88 }
 0x225   :  { %976 = vsyncpa [#allocation3], 1 }
 0x226   :  { %978 = vsyncpa [#allocation3 + $0x1], 1 }
 0x227   :  { %979 = vsyncpa [#allocation4], 1 }
 0x228   :  { %981 = vsyncpa [#allocation4 + $0x1], 1 }

</bundles_post_ra>
